<compile_context>
chip_gen: v7x
topology: tpu7x:2x2x1
jax: 0.10.0
libtpu: 0.0.40
codegen_flags: <defaults>
</compile_context>

<pallas_src>
import jax
import jax.numpy as jnp
import numpy as np
from jax.experimental import pallas as pl
from jax.experimental.pallas import tpu as pltpu

INPUT_SIZE = 28
HIDDEN_SIZE = 32
NUM_CLASSES = 10
NUM_LAYERS = 2  # hard-wired as the 2x2 block structure of Wblk inside the kernel


def _round_up(n, m):
    return ((n + m - 1) // m) * m


# ----- parameter-slab row offsets (all blocks start on an 8-row boundary) ----
_D, _H, _C = INPUT_SIZE, HIDDEN_SIZE, NUM_CLASSES
_R_W0AUG = 0                                   # rows [0, D)        cols [0, 2H)
_R_WBLK = _round_up(_R_W0AUG + _D, 8)          # rows [32, 32+2H)   cols [0, 2H)
_R_WFC = _round_up(_R_WBLK + 2 * _H, 8)        # rows [96, 96+H)    cols [0, C)
_R_B0AUG = _round_up(_R_WFC + _H, 8)           # row 128            cols [0, 2H)
_R_BFC = _R_B0AUG + 1                          # row 129            cols [0, C)
_SLAB_ROWS = _round_up(_R_BFC + 1, 8)          # 136
_SLAB_COLS = 128


def pack_params(params):
    """One-time packing of all parameters into a single (136, 128) f32 slab.

    Exact reorderings only: fused biases b0=b_ih0+b_hh0, b1=b_ih1+b_hh1, the
    skewed block weight Wblk=[[Whh0, Wih1],[0, Whh1]], and the augmented input
    projection [Wih0 | 0] / [b0 | b1] (the zero block makes the right half of
    the hoisted projection exactly b1 for every row).
    """
    (wih0, whh0, bih0, bhh0, wih1, whh1, bih1, bhh1, wfc, bfc) = params
    D, H, C = _D, _H, _C

    b0 = bih0 + bhh0                                              # (1, H)
    b1 = bih1 + bhh1                                              # (1, H)
    w0_aug = jnp.concatenate([wih0, jnp.zeros((D, H), jnp.float32)], axis=1)   # (D, 2H)
    b0_aug = jnp.concatenate([b0, b1], axis=1)                    # (1, 2H)
    wblk = jnp.concatenate(
        [jnp.concatenate([whh0, wih1], axis=1),
         jnp.concatenate([jnp.zeros((H, H), jnp.float32), whh1], axis=1)],
        axis=0)                                                   # (2H, 2H)

    slab = jnp.zeros((_SLAB_ROWS, _SLAB_COLS), jnp.float32)
    slab = slab.at[_R_W0AUG:_R_W0AUG + D, 0:2 * H].set(w0_aug)
    slab = slab.at[_R_WBLK:_R_WBLK + 2 * H, 0:2 * H].set(wblk)
    slab = slab.at[_R_WFC:_R_WFC + H, 0:C].set(wfc)
    slab = slab.at[_R_B0AUG, 0:2 * H].set(b0_aug[0])
    slab = slab.at[_R_BFC, 0:C].set(bfc[0])
    return slab


def _make_kernel(T, B, B_pad):
    """Kernel specialized on static (T, B, B_pad)."""
    D, H, C = _D, _H, _C
    H2 = 2 * H

    def kernel(x_ref, slab_ref, out_ref):
        # x_ref:    (T*B_pad, D) time-major, batch padded to the sublane tile
        # slab_ref: (136, 128)   packed parameters
        # out_ref:  (B, C)

        # ---- one-time weight extraction (off the recurrent critical path) ----
        w0a = slab_ref[_R_W0AUG:_R_W0AUG + D, 0:H2]                    # (D, 2H) f32
        wblk = slab_ref[_R_WBLK:_R_WBLK + H2, 0:H2].astype(jnp.bfloat16)  # (2H,2H) bf16
        wfc = slab_ref[_R_WFC:_R_WFC + H, 0:C]                         # (H, C)  f32
        b0a = slab_ref[_R_B0AUG:_R_B0AUG + 1, 0:H2]                    # (1, 2H)
        bfc = slab_ref[_R_BFC:_R_BFC + 1, 0:C]                         # (1, C)

        # Hoisted projection of ALL timesteps in one matmul.
        # add[:, :H]  = x_t @ Wih0 + b_ih0 + b_hh0   (= xp_t)
        # add[:, H:]  = b_ih1 + b_hh1 exactly         (zero block in w0a)
        add = jnp.dot(x_ref[...], w0a,
                      preferred_element_type=jnp.float32) + b0a        # (T*8, 2H)

        # Macro-step 0: h0_0 = tanh(xp_0), h1_{-1} = 0 (initial state).
        h0 = jnp.tanh(add[0:B_pad, 0:H])                                # (8, H)
        p = jnp.concatenate([h0, jnp.zeros_like(h0)], axis=-1)          # (8, 2H)

        # Skewed macro-steps s = 1..T-1: p = [h0_s ; h1_{s-1}]
        #   one bf16 MXU matmul + one whole-vreg add + one tanh per step.
        for s in range(1, T):
            a = add[s * B_pad:(s + 1) * B_pad, :]                       # 8-aligned slice
            p = jnp.tanh(
                jnp.dot(p.astype(jnp.bfloat16), wblk,
                        preferred_element_type=jnp.float32) + a)

        # Final skewed step (s = T): layer-1 at t = T-1. The left half is
        # don't-care; add[0:8, H:] is exactly b1, so block 0 is reused.
        p = jnp.tanh(
            jnp.dot(p.astype(jnp.bfloat16), wblk,
                    preferred_element_type=jnp.float32) + add[0:B_pad, :])
        h1_last = p[:, H:]                                              # (8, H)

        logits = jnp.dot(h1_last, wfc,
                         preferred_element_type=jnp.float32) + bfc      # (8, C)
        out_ref[...] = logits[0:B, :]                                   # real batch only

    return kernel


def _rnn_forward_impl(x, slab):
    """x: (B, T, D) float32 batch_first (like the PyTorch module); slab: packed params."""
    B, T, D = x.shape
    B_pad = max(8, _round_up(B, 8))

    # Tiny layout prep: time-major + pad batch to the 8-sublane tile. Under jit
    # this fuses into the same executable as the pallas_call (no separate
    # dispatch); it can also be hoisted to data-prep time entirely.
    xt = jnp.transpose(x, (1, 0, 2))                       # (T, B, D)
    xt = jnp.pad(xt, ((0, 0), (0, B_pad - B), (0, 0)))     # (T, 8, D)
    x_flat = xt.reshape(T * B_pad, D)                      # (T*8, D)

    vmem = pltpu.MemorySpace.VMEM
    return pl.pallas_call(
        _make_kernel(T, B, B_pad),
        out_shape=jax.ShapeDtypeStruct((B, NUM_CLASSES), jnp.float32),
        in_specs=[pl.BlockSpec(memory_space=vmem),    # x (time-major, padded)
                  pl.BlockSpec(memory_space=vmem)],   # parameter slab
        out_specs=pl.BlockSpec(memory_space=vmem),
    )(x_flat, slab)


rnn_forward = jax.jit(_rnn_forward_impl)


def init_params(key):
    """Deterministic init, PyTorch-style U(-1/sqrt(H), 1/sqrt(H)).

    Matrices are stored pre-transposed relative to PyTorch so math is x @ W;
    biases are (1, H)/(1, C) for 2-D broadcasting.
    """
    H, D, C = HIDDEN_SIZE, INPUT_SIZE, NUM_CLASSES
    bound = 1.0 / np.sqrt(H)
    keys = jax.random.split(key, 10)
    u = lambda k, shape: jax.random.uniform(k, shape, jnp.float32, -bound, bound)
    return (
        u(keys[0], (D, H)),  # W_ih_l0^T
        u(keys[1], (H, H)),  # W_hh_l0^T
        u(keys[2], (1, H)),  # b_ih_l0
        u(keys[3], (1, H)),  # b_hh_l0
        u(keys[4], (H, H)),  # W_ih_l1^T
        u(keys[5], (H, H)),  # W_hh_l1^T
        u(keys[6], (1, H)),  # b_ih_l1
        u(keys[7], (1, H)),  # b_hh_l1
        u(keys[8], (H, C)),  # W_fc^T
        u(keys[9], (1, C)),  # b_fc
    )


def rnn_reference(x, params):
    """Pure-JAX reference with the original (unfused, f32) op structure."""
    (wih0, whh0, bih0, bhh0, wih1, whh1, bih1, bhh1, wfc, bfc) = params
    B, T, D = x.shape
    h0 = jnp.zeros((B, HIDDEN_SIZE), jnp.float32)
    h1 = jnp.zeros((B, HIDDEN_SIZE), jnp.float32)
    for t in range(T):
        x_t = x[:, t, :]
        h0 = jnp.tanh(x_t @ wih0 + bih0 + h0 @ whh0 + bhh0)
        h1 = jnp.tanh(h0 @ wih1 + bih1 + h1 @ whh1 + bhh1)
    return h1 @ wfc + bfc


if __name__ == "__main__":
    key = jax.random.PRNGKey(0)
    k_param, k_x = jax.random.split(key)

    B, T = 2, 8  # small batch / sequence length (e.g. 8 rows of a 28-wide image)
    x = jax.random.normal(k_x, (B, T, INPUT_SIZE), jnp.float32)
    params = init_params(k_param)
    slab = pack_params(params)   # one-time parameter packing (outside the per-call path)

    out = rnn_forward(x, slab)
    out = jax.block_until_ready(out)

    ref = rnn_reference(x, params)
    # Tolerance relaxed because the recurrent matmuls use bf16 MXU operands
    # (f32 accumulation); error compounds mildly over the 8 recurrent steps.
    # Structural/packing changes (bias fusion, skewed block weight) are exact.
    np.testing.assert_allclose(np.asarray(out), np.asarray(ref),
                               rtol=3e-2, atol=3e-2)

    print("KERNEL_OK")
</pallas_src>

<mosaic_0001>
module attributes {stable_mosaic.version = 11 : i64} {
  func.func @kernel(%arg0: memref<64x28xf32, #tpu.memory_space<vmem>>, %arg1: memref<136x128xf32, #tpu.memory_space<vmem>>, %arg2: memref<2x10xf32, #tpu.memory_space<vmem>>) attributes {dimension_semantics = [], scalar_prefetch = 0 : i64, scratch_operands = 0 : i64, tpu.core_type = #tpu.core_type<tc>} {
    %c0 = arith.constant 0 : index
    %c0_0 = arith.constant 0 : index
    %0 = vector.load %arg1[%c0, %c0_0] : memref<136x128xf32, #tpu.memory_space<vmem>>, vector<28x64xf32>
    %c32 = arith.constant 32 : index
    %c0_1 = arith.constant 0 : index
    %1 = vector.load %arg1[%c32, %c0_1] : memref<136x128xf32, #tpu.memory_space<vmem>>, vector<64x64xf32>
    %2 = arith.truncf %1 : vector<64x64xf32> to vector<64x64xbf16>
    %c96 = arith.constant 96 : index
    %c0_2 = arith.constant 0 : index
    %3 = vector.load %arg1[%c96, %c0_2] : memref<136x128xf32, #tpu.memory_space<vmem>>, vector<32x10xf32>
    %c128 = arith.constant 128 : index
    %c0_3 = arith.constant 0 : index
    %4 = vector.load %arg1[%c128, %c0_3] : memref<136x128xf32, #tpu.memory_space<vmem>>, vector<1x64xf32>
    %c129 = arith.constant 129 : index
    %c0_4 = arith.constant 0 : index
    %5 = vector.load %arg1[%c129, %c0_4] : memref<136x128xf32, #tpu.memory_space<vmem>>, vector<1x10xf32>
    %c0_5 = arith.constant 0 : index
    %c0_6 = arith.constant 0 : index
    %6 = vector.load %arg0[%c0_5, %c0_6] : memref<64x28xf32, #tpu.memory_space<vmem>>, vector<64x28xf32>
    %cst = arith.constant dense<0.000000e+00> : vector<64x64xf32>
    %7 = tpu.matmul %6, %0, %cst {dimension_numbers = #tpu.dot_dimension_numbers<[1], [0], [0], [1], [0, 0, 1, 1], [], []>} : vector<64x28xf32>, vector<28x64xf32>, vector<64x64xf32> -> vector<64x64xf32>
    %8 = vector.broadcast %4 : vector<1x64xf32> to vector<64x64xf32>
    %9 = arith.addf %7, %8 : vector<64x64xf32>
    %10 = vector.extract_strided_slice %9 {offsets = [0, 0], sizes = [8, 32], strides = [1, 1]} : vector<64x64xf32> to vector<8x32xf32>
    %11 = math.tanh %10 : vector<8x32xf32>
    %cst_7 = arith.constant 0.000000e+00 : f32
    %12 = vector.broadcast %cst_7 : f32 to vector<8x32xf32>
    %13 = tpu.concatenate %11, %12 in 1 : vector<8x32xf32>, vector<8x32xf32> -> vector<8x64xf32>
    %14 = vector.extract_strided_slice %9 {offsets = [8, 0], sizes = [8, 64], strides = [1, 1]} : vector<64x64xf32> to vector<8x64xf32>
    %15 = arith.truncf %13 : vector<8x64xf32> to vector<8x64xbf16>
    %cst_8 = arith.constant dense<0.000000e+00> : vector<8x64xf32>
    %16 = tpu.matmul %15, %2, %cst_8 {dimension_numbers = #tpu.dot_dimension_numbers<[1], [0], [0], [1], [0, 0, 1, 1], [], []>} : vector<8x64xbf16>, vector<64x64xbf16>, vector<8x64xf32> -> vector<8x64xf32>
    %17 = arith.addf %16, %14 : vector<8x64xf32>
    %18 = math.tanh %17 : vector<8x64xf32>
    %19 = vector.extract_strided_slice %9 {offsets = [16, 0], sizes = [8, 64], strides = [1, 1]} : vector<64x64xf32> to vector<8x64xf32>
    %20 = arith.truncf %18 : vector<8x64xf32> to vector<8x64xbf16>
    %cst_9 = arith.constant dense<0.000000e+00> : vector<8x64xf32>
    %21 = tpu.matmul %20, %2, %cst_9 {dimension_numbers = #tpu.dot_dimension_numbers<[1], [0], [0], [1], [0, 0, 1, 1], [], []>} : vector<8x64xbf16>, vector<64x64xbf16>, vector<8x64xf32> -> vector<8x64xf32>
    %22 = arith.addf %21, %19 : vector<8x64xf32>
    %23 = math.tanh %22 : vector<8x64xf32>
    %24 = vector.extract_strided_slice %9 {offsets = [24, 0], sizes = [8, 64], strides = [1, 1]} : vector<64x64xf32> to vector<8x64xf32>
    %25 = arith.truncf %23 : vector<8x64xf32> to vector<8x64xbf16>
    %cst_10 = arith.constant dense<0.000000e+00> : vector<8x64xf32>
    %26 = tpu.matmul %25, %2, %cst_10 {dimension_numbers = #tpu.dot_dimension_numbers<[1], [0], [0], [1], [0, 0, 1, 1], [], []>} : vector<8x64xbf16>, vector<64x64xbf16>, vector<8x64xf32> -> vector<8x64xf32>
    %27 = arith.addf %26, %24 : vector<8x64xf32>
    %28 = math.tanh %27 : vector<8x64xf32>
    %29 = vector.extract_strided_slice %9 {offsets = [32, 0], sizes = [8, 64], strides = [1, 1]} : vector<64x64xf32> to vector<8x64xf32>
    %30 = arith.truncf %28 : vector<8x64xf32> to vector<8x64xbf16>
    %cst_11 = arith.constant dense<0.000000e+00> : vector<8x64xf32>
    %31 = tpu.matmul %30, %2, %cst_11 {dimension_numbers = #tpu.dot_dimension_numbers<[1], [0], [0], [1], [0, 0, 1, 1], [], []>} : vector<8x64xbf16>, vector<64x64xbf16>, vector<8x64xf32> -> vector<8x64xf32>
    %32 = arith.addf %31, %29 : vector<8x64xf32>
    %33 = math.tanh %32 : vector<8x64xf32>
    %34 = vector.extract_strided_slice %9 {offsets = [40, 0], sizes = [8, 64], strides = [1, 1]} : vector<64x64xf32> to vector<8x64xf32>
    %35 = arith.truncf %33 : vector<8x64xf32> to vector<8x64xbf16>
    %cst_12 = arith.constant dense<0.000000e+00> : vector<8x64xf32>
    %36 = tpu.matmul %35, %2, %cst_12 {dimension_numbers = #tpu.dot_dimension_numbers<[1], [0], [0], [1], [0, 0, 1, 1], [], []>} : vector<8x64xbf16>, vector<64x64xbf16>, vector<8x64xf32> -> vector<8x64xf32>
    %37 = arith.addf %36, %34 : vector<8x64xf32>
    %38 = math.tanh %37 : vector<8x64xf32>
    %39 = vector.extract_strided_slice %9 {offsets = [48, 0], sizes = [8, 64], strides = [1, 1]} : vector<64x64xf32> to vector<8x64xf32>
    %40 = arith.truncf %38 : vector<8x64xf32> to vector<8x64xbf16>
    %cst_13 = arith.constant dense<0.000000e+00> : vector<8x64xf32>
    %41 = tpu.matmul %40, %2, %cst_13 {dimension_numbers = #tpu.dot_dimension_numbers<[1], [0], [0], [1], [0, 0, 1, 1], [], []>} : vector<8x64xbf16>, vector<64x64xbf16>, vector<8x64xf32> -> vector<8x64xf32>
    %42 = arith.addf %41, %39 : vector<8x64xf32>
    %43 = math.tanh %42 : vector<8x64xf32>
    %44 = vector.extract_strided_slice %9 {offsets = [56, 0], sizes = [8, 64], strides = [1, 1]} : vector<64x64xf32> to vector<8x64xf32>
    %45 = arith.truncf %43 : vector<8x64xf32> to vector<8x64xbf16>
    %cst_14 = arith.constant dense<0.000000e+00> : vector<8x64xf32>
    %46 = tpu.matmul %45, %2, %cst_14 {dimension_numbers = #tpu.dot_dimension_numbers<[1], [0], [0], [1], [0, 0, 1, 1], [], []>} : vector<8x64xbf16>, vector<64x64xbf16>, vector<8x64xf32> -> vector<8x64xf32>
    %47 = arith.addf %46, %44 : vector<8x64xf32>
    %48 = math.tanh %47 : vector<8x64xf32>
    %49 = arith.truncf %48 : vector<8x64xf32> to vector<8x64xbf16>
    %cst_15 = arith.constant dense<0.000000e+00> : vector<8x64xf32>
    %50 = tpu.matmul %49, %2, %cst_15 {dimension_numbers = #tpu.dot_dimension_numbers<[1], [0], [0], [1], [0, 0, 1, 1], [], []>} : vector<8x64xbf16>, vector<64x64xbf16>, vector<8x64xf32> -> vector<8x64xf32>
    %51 = vector.extract_strided_slice %9 {offsets = [0, 0], sizes = [8, 64], strides = [1, 1]} : vector<64x64xf32> to vector<8x64xf32>
    %52 = arith.addf %50, %51 : vector<8x64xf32>
    %53 = math.tanh %52 : vector<8x64xf32>
    %54 = vector.extract_strided_slice %53 {offsets = [0, 32], sizes = [8, 32], strides = [1, 1]} : vector<8x64xf32> to vector<8x32xf32>
    %cst_16 = arith.constant dense<0.000000e+00> : vector<8x10xf32>
    %55 = tpu.matmul %54, %3, %cst_16 {dimension_numbers = #tpu.dot_dimension_numbers<[1], [0], [0], [1], [0, 0, 1, 1], [], []>} : vector<8x32xf32>, vector<32x10xf32>, vector<8x10xf32> -> vector<8x10xf32>
    %56 = vector.broadcast %5 : vector<1x10xf32> to vector<8x10xf32>
    %57 = arith.addf %55, %56 : vector<8x10xf32>
    %58 = vector.extract_strided_slice %57 {offsets = [0, 0], sizes = [2, 10], strides = [1, 1]} : vector<8x10xf32> to vector<2x10xf32>
    %c0_17 = arith.constant 0 : index
    %c0_18 = arith.constant 0 : index
    %59 = vector.load %arg2[%c0_17, %c0_18] : memref<2x10xf32, #tpu.memory_space<vmem>>, vector<2x10xf32>
    tpu.vector_store %arg2[%c0_17, %c0_18], %58 {strides = array<i32>} : memref<2x10xf32, #tpu.memory_space<vmem>>, vector<2x10xf32>,
    return
  }
}

</mosaic_0001>

<bundles_post_ra>
// kernel: _rnn_forward_impl.1
= control target key start
LH: loop header
LB: loop body
LE: loop exit
PB: predicated region body
PF: predicated region fallthrough
CT: control target
= control target key end

     0   :  { %7 = vsyncpa [#allocation3], 0  ;;  %s1150_s0 = inlined_call_operand.vmem [shape: f32[64,28], index: 0, kind: input, shape index: {}]   ;;  %s1151_s1 = inlined_call_operand.hbm [shape: f32[136,128], index: 1, kind: input, shape index: {}]   ;;  %s1152_s2 = inlined_call_operand.hbm [shape: f32[2,10], index: 2, kind: output, shape index: {}]  }
   0x1   :  { %8 = vsyncpa [#allocation4], 0  ;;  %s950_s9 = smov [#allocation2]   ;;  %s902_s13 = scalar_lea.hbm %s1151_s1, 2176 }
   0x2   :  { %s16_s10 = sshll.u32 %s950_s9, 4  ;;  %p903_p0 = scmp.ne.s32.totalorder %s1151_s1, %s902_s13  ;;  %s17_s10 = int_to_ptr.vmem [resolvable:$true] %s16_s10 }
   0x3   :  { %p906_p1 = scmp.lt.u32.totalorder %s902_s13, %s1151_s1 }
   0x5   :  { %p908_p2 = pnand %p906_p1, %p903_p0 }
   0x7   :  { %911 = shalt.err (!%p908_p2)
}
   0x8   :  { %s912_s18 = scalar_lea.vmem %s17_s10, 2176  ;;  %p917_p4 = scmp.lt.s32.totalorder %s17_s10, %s17_s10 }
   0x9   :  { %p913_p3 = scmp.ne.s32.totalorder %s17_s10, %s912_s18  ;;  %p918_p5 = scmp.lt.s32.totalorder %s912_s18, %s912_s18 }
   0xb   :  { %p919_p6 = por %p918_p5, %p917_p4 }
   0xd   :  { %p920_p7 = pnand %p919_p6, %p913_p3 }
   0xf   :  { %923 = shalt.err (!%p920_p7)
}
  0x10   :  { %s951_s19 = smov 128   ;;  %s952_s20 = smov 8  }
  0x11   :  { %22 = dma.hbm_to_vmem [thread:$0]  %s1151_s1, 2176, %s17_s10, [#allocation3], %s951_s19, %s951_s19, %s952_s20  }
  0x12   :  { %946 = dma.done.wait [#allocation3], 2176  }
  0x13   :  { %947 = vsyncadd [#allocation3], 4294965120  ;;  %vm86_vm0 = vcmask 1043456   ;;  %vm61_vm1 = vcmask 228352   ;;  %v27_v0 = vld [vmem:[#allocation2] sm:$0xff]  ;;  %v28_v1 = vld [vmem:[#allocation2 + $0x8] sm:$0xff] }
  0x14   :  { %v29_v2 = vld [vmem:[#allocation2 + $0x10] sm:$0xff]  ;;  %v859_v3 = vpack.c.bf16 %v28_v1, %v27_v0  ;;  %v30_v4 = vld [vmem:[#allocation2 + $0x18] sm:$0xf]  ;;  %v49_v5 = vld [vmem:[%s1150_s0] sm:$0xff]  ;;  %vm953_vm2 = vmmov 1   ;;  %v954_v11 = vmov 0.0  }
  0x15   :  { %v863_v6 = vpack.c.bf16 %v30_v4, %v29_v2  ;;  %vm864_vm3 = vmpackc.low %vm86_vm0, %vm953_vm2  ;;  %740 = vmatprep.mubr.msk.f32.mxu0 %vm61_vm1, %v49_v5  ;;  %v50_v7 = vld [vmem:[%s1150_s0 + $0x8] sm:$0xff]  ;;  %v31_v8 = vld [vmem:[#allocation2 + $0x20] sm:$0xff]  ;;  %752 = vmatprep.subr.bf16.mxu1 %v954_v11  ;;  %vm955_vm4 = vmmov 0   ;;  %vm196_vm5 = vcmask 261120   ;;  %vm199_vm6 = vcmask 523264   ;;  %s958_s10 = smov [#allocation5]  }
  0x16   :  { %860 = vmatprep.subr.bf16.mxu0 %v859_v3  ;;  %v32_v9 = vld [vmem:[#allocation2 + $0x28] sm:$0xff]  ;;  %v33_v12 = vld [vmem:[#allocation2 + $0x30] sm:$0xff]  ;;  %v34_v13 = vld [vmem:[#allocation2 + $0x38] sm:$0xff]  ;;  %760 = vmatprep.mubr.msk.bf16.mxu1 %vm955_vm4, %v954_v11  ;;  %s646_s11 = sshll.u32 %s958_s10, 4  ;;  %vm638_vm7 = vcmask 74752   ;;  %s647_s11 = int_to_ptr.vmem [resolvable:$true] %s646_s11 }
  0x17   :  { %862 = vmatpush3.bf16.msra.mxu0 %v859_v3  ;;  %v994_v10 = vpack.c.bf16 %v32_v9, %v31_v8  ;;  %v35_v14 = vld [vmem:[#allocation2 + $0x40] sm:$0xff]  ;;  %v1002_v15 = vpack.c.bf16 %v34_v13, %v33_v12  ;;  %v36_v16 = vld [vmem:[#allocation2 + $0x48] sm:$0xff]  ;;  %v37_v18 = vld [vmem:[#allocation2 + $0x50] sm:$0xff]  ;;  %s924_s12 = scalar_lea.vmem %s647_s11, 32  ;;  %p929_p9 = scmp.lt.s32.totalorder %s647_s11, %s647_s11 }
  0x18   :  { %865 = vmatprep.subr.msk.bf16.mxu0 %vm864_vm3, %v863_v6  ;;  %v1007_v17 = vpack.c.bf16 %v36_v16, %v35_v14  ;;  %v38_v19 = vld [vmem:[#allocation2 + $0x58] sm:$0xff]  ;;  %v1022_v21 = vld [vmem:[#allocation2 + $0x80] ss:$0 sm:$0xff]  ;;  %v51_v28 = vld [vmem:[%s1150_s0 + $0x10] sm:$0xff]  ;;  %p925_p8 = scmp.ne.s32.totalorder %s647_s11, %s924_s12  ;;  %p930_p10 = scmp.lt.s32.totalorder %s924_s12, %s924_s12 }
  0x19   :  { %753 = vmatpush3.bf16.msra.mxu1 %v994_v10  ;;  %v1013_v20 = vpack.c.bf16 %v38_v19, %v37_v18  ;;  %v52_v29 = vld [vmem:[%s1150_s0 + $0x18] sm:$0xff]  ;;  %v53_v30 = vld [vmem:[%s1150_s0 + $0x20] sm:$0xff]  ;;  %v54_v31 = vld [vmem:[%s1150_s0 + $0x28] sm:$0xff] }
  0x1a   :  { %754 = vmatprep.subr.bf16.mxu1 %v954_v11  ;;  %v55_v32 = vld [vmem:[%s1150_s0 + $0x30] sm:$0xff]  ;;  %v56_v33 = vld [vmem:[%s1150_s0 + $0x38] sm:$0xff]  ;;  %s957_s0 = smov 96   ;;  %p931_p11 = por %p930_p10, %p929_p9 }
  0x1b   :  { %868 = vmatpush3.bf16.msk.msra.mxu0 %vm864_vm3, %v863_v6 }
  0x1c   :  { %764 = vmatprep.subr.bf16.mxu0 %v954_v11  ;;  %p932_p12 = pnand %p931_p11, %p925_p8 }
  0x1d   :  { %755 = vmatpush3.bf16.msra.mxu1 %v1002_v15 }
  0x1e   :  { %741 = vmatmul.mubr.msk.f32.vlgmr.msra.gmra.mrb[0].mxu0 %vm61_vm1, %v50_v7  ;;  %756 = vmatprep.subr.bf16.mxu1 %v954_v11 }
  0x1f   :  { %765 = vmatpush3.bf16.msra.mxu0 %v994_v10  ;;  %743 = vmatprep.mubr.msk.f32.mxu0 %vm61_vm1, %v51_v28 }
  0x20   :  { %766 = vmatprep.subr.bf16.mxu0 %v954_v11 }
  0x21   :  { %757 = vmatpush3.bf16.msra.mxu1 %v1007_v17 }
  0x22   :  { %758 = vmatprep.subr.bf16.mxu1 %v954_v11  ;;  %744 = vmatmul.mubr.msk.f32.gmra.mrb[2].mxu0 %vm61_vm1, %v52_v29 }
  0x23   :  { %767 = vmatpush3.bf16.msra.mxu0 %v1002_v15  ;;  %746 = vmatprep.mubr.msk.f32.mxu0 %vm61_vm1, %v53_v30 }
  0x24   :  { %768 = vmatprep.subr.bf16.mxu0 %v954_v11 }
  0x25   :  { %759 = vmatpush3.bf16.msra.mxu1 %v1013_v20 }
  0x26   :  { %776 = vmatprep.subr.bf16.mxu1 %v954_v11  ;;  %747 = vmatmul.mubr.msk.f32.gmra.mrb[4].mxu0 %vm61_vm1, %v54_v31 }
  0x27   :  { %769 = vmatpush3.bf16.msra.mxu0 %v1007_v17  ;;  %749 = vmatprep.mubr.msk.f32.mxu0 %vm61_vm1, %v55_v32 }
  0x28   :  { %770 = vmatprep.subr.bf16.mxu0 %v954_v11 }
  0x2a   :  { %750 = vmatmul.mubr.msk.f32.gmra.mrb[6].mxu0 %vm61_vm1, %v56_v33 }
  0x2b   :  { %771 = vmatpush3.bf16.msra.mxu0 %v1013_v20  ;;  %772 = vmatprep.mubr.msk.bf16.mxu0 %vm955_vm4, %v954_v11 }
  0x2c   :  { %788 = vmatprep.subr.bf16.mxu0 %v954_v11 }
  0xf1   :  { %v742_v22 = vpop.f32.mrb[0].mxu0 }
  0xf2   :  { %v156_v23 = vpop.f32.mrb[1].mxu0  ;;  %v162_v34 = vadd.f32 %v742_v22, %v1022_v21 }
  0xf3   :  { %v1025_v24 = vadd.f32 %v1022_v21, %v156_v23 }
  0xf5   :  { %884 = vtanh.f32 %v1025_v24  ;;  %v745_v42 = vpop.f32.mrb[2].mxu0 }
  0xf6   :  { %v166_v43 = vpop.f32.mrb[3].mxu0  ;;  %v172_v56 = vadd.f32 %v745_v42, %v1022_v21 }
  0xf7   :  { %v167_v48 = vadd.f32 %v1022_v21, %v166_v43 }
  0xf9   :  { %v748_v44 = vpop.f32.mrb[4].mxu0 }
  0xfa   :  { %v176_v45 = vpop.f32.mrb[5].mxu0  ;;  %v182_v8 = vadd.f32 %v748_v44, %v1022_v21 }
  0xfb   :  { %v177_v0 = vadd.f32 %v1022_v21, %v176_v45 }
  0xfd   :  { %v1078_v46 = vpop.f32.mrb[6].mxu0 }
  0xfe   :  { %v1080_v47 = vpop.f32.mrb[7].mxu0 }
  0xff   :  { %v885_v25 = vpop.eup %884  ;;  %v187_v22 = vadd.f32 %v1022_v21, %v1080_v47  ;;  %v673_v47 = vld [vmem:[#allocation2 + $0x81] ss:$0 sm:$0xff] }
 0x100   :  { %v197_v26 = vsel %vm196_vm5, %v885_v25, 0.0 }
 0x101   :  { %v198_v27 = vpack.c.bf16 %v197_v26, %v197_v26 }
 0x103   :  { %761 = vmatmul.mubr.msk.bf16.vlgmr.msra.gmra.mrb[0].mxu1 %vm199_vm6, %v198_v27 }
 0x104   :  { %777 = vmatpush3.bf16.msra.mxu1 %v994_v10  ;;  %784 = vmatprep.mubr.msk.bf16.mxu1 %vm955_vm4, %v954_v11 }
 0x105   :  { %778 = vmatprep.subr.bf16.mxu1 %v954_v11 }
 0x108   :  { %779 = vmatpush3.bf16.msra.mxu1 %v1002_v15 }
 0x109   :  { %780 = vmatprep.subr.bf16.mxu1 %v954_v11 }
 0x10c   :  { %781 = vmatpush3.bf16.msra.mxu1 %v1007_v17 }
 0x10d   :  { %782 = vmatprep.subr.bf16.mxu1 %v954_v11 }
 0x110   :  { %783 = vmatpush3.bf16.msra.mxu1 %v1013_v20 }
 0x111   :  { %800 = vmatprep.subr.bf16.mxu1 %v954_v11 }
 0x1d6   :  { %v237_v35 = vpop.f32.mrb[0].mxu1 }
 0x1d7   :  { %v238_v36 = vadd.f32 %v237_v35, %v162_v34  ;;  %v762_v37 = vpop.f32.mrb[1].mxu1  ;;  %v43_v35 = vld [vmem:[#allocation2 + $0x60] sm:$0xff] }
 0x1d8   :  { %v240_v38 = vpop.f32.mrb[2].mxu1  ;;  %v45_v37 = vld [vmem:[#allocation2 + $0x70] sm:$0xff] }
 0x1d9   :  { %886 = vtanh.f32 %v238_v36  ;;  %v763_v39 = vpop.f32.mrb[3].mxu1  ;;  %v44_v36 = vld [vmem:[#allocation2 + $0x68] sm:$0xff]  ;;  %v956_v38 = vmov 0.0|0.0  }
 0x1da   :  { %v870_v39 = vpack.c.bf16 %v44_v36, %v43_v35 }
 0x1e3   :  { %v887_v40 = vpop.eup %886 }
 0x1e4   :  { %v244_v41 = vpack.c.bf16 %v887_v40, %v887_v40 }
 0x1e6   :  { %773 = vmatmul.mubr.msk.bf16.vlgmr.msra.gmra.mrb[8].mxu0 %vm199_vm6, %v244_v41 }
 0x1e7   :  { %789 = vmatpush3.bf16.msra.mxu0 %v994_v10  ;;  %796 = vmatprep.mubr.msk.bf16.mxu0 %vm955_vm4, %v954_v11 }
 0x1e8   :  { %790 = vmatprep.subr.bf16.mxu0 %v954_v11 }
 0x1eb   :  { %791 = vmatpush3.bf16.msra.mxu0 %v1002_v15 }
 0x1ec   :  { %792 = vmatprep.subr.bf16.mxu0 %v954_v11 }
 0x1ef   :  { %793 = vmatpush3.bf16.msra.mxu0 %v1007_v17 }
 0x1f0   :  { %794 = vmatprep.subr.bf16.mxu0 %v954_v11 }
 0x1f3   :  { %795 = vmatpush3.bf16.msra.mxu0 %v1013_v20 }
 0x1f4   :  { %812 = vmatprep.subr.bf16.mxu0 %v954_v11 }
 0x2b9   :  { %v282_v49 = vpop.f32.mrb[8].mxu0 }
 0x2ba   :  { %v283_v50 = vadd.f32 %v282_v49, %v167_v48  ;;  %v774_v51 = vpop.f32.mrb[9].mxu0 }
 0x2bb   :  { %v285_v52 = vpop.f32.mrb[10].mxu0 }
 0x2bc   :  { %888 = vtanh.f32 %v283_v50  ;;  %v775_v53 = vpop.f32.mrb[11].mxu0 }
 0x2c6   :  { %v889_v54 = vpop.eup %888 }
 0x2c7   :  { %v289_v55 = vpack.c.bf16 %v889_v54, %v889_v54 }
 0x2c9   :  { %785 = vmatmul.mubr.msk.bf16.vlgmr.msra.gmra.mrb[4].mxu1 %vm199_vm6, %v289_v55 }
 0x2ca   :  { %801 = vmatpush3.bf16.msra.mxu1 %v994_v10  ;;  %808 = vmatprep.mubr.msk.bf16.mxu1 %vm955_vm4, %v954_v11 }
 0x2cb   :  { %802 = vmatprep.subr.bf16.mxu1 %v954_v11 }
 0x2ce   :  { %803 = vmatpush3.bf16.msra.mxu1 %v1002_v15 }
 0x2cf   :  { %804 = vmatprep.subr.bf16.mxu1 %v954_v11 }
 0x2d2   :  { %805 = vmatpush3.bf16.msra.mxu1 %v1007_v17 }
 0x2d3   :  { %806 = vmatprep.subr.bf16.mxu1 %v954_v11 }
 0x2d6   :  { %807 = vmatpush3.bf16.msra.mxu1 %v1013_v20 }
 0x2d7   :  { %824 = vmatprep.subr.bf16.mxu1 %v954_v11 }
 0x39c   :  { %v327_v57 = vpop.f32.mrb[4].mxu1 }
 0x39d   :  { %v328_v58 = vadd.f32 %v327_v57, %v172_v56  ;;  %v786_v59 = vpop.f32.mrb[5].mxu1 }
 0x39e   :  { %v330_v60 = vpop.f32.mrb[6].mxu1 }
 0x39f   :  { %890 = vtanh.f32 %v328_v58  ;;  %v787_v61 = vpop.f32.mrb[7].mxu1 }
 0x3a9   :  { %v891_v62 = vpop.eup %890 }
 0x3aa   :  { %v334_v63 = vpack.c.bf16 %v891_v62, %v891_v62 }
 0x3ac   :  { %797 = vmatmul.mubr.msk.bf16.vlgmr.msra.gmra.mrb[12].mxu0 %vm199_vm6, %v334_v63 }
 0x3ad   :  { %813 = vmatpush3.bf16.msra.mxu0 %v994_v10  ;;  %820 = vmatprep.mubr.msk.bf16.mxu0 %vm955_vm4, %v954_v11 }
 0x3ae   :  { %814 = vmatprep.subr.bf16.mxu0 %v954_v11 }
 0x3b1   :  { %815 = vmatpush3.bf16.msra.mxu0 %v1002_v15 }
 0x3b2   :  { %816 = vmatprep.subr.bf16.mxu0 %v954_v11 }
 0x3b5   :  { %817 = vmatpush3.bf16.msra.mxu0 %v1007_v17 }
 0x3b6   :  { %818 = vmatprep.subr.bf16.mxu0 %v954_v11 }
 0x3b9   :  { %819 = vmatpush3.bf16.msra.mxu0 %v1013_v20 }
 0x3ba   :  { %836 = vmatprep.subr.bf16.mxu0 %v954_v11 }
 0x47f   :  { %v372_v1 = vpop.f32.mrb[12].mxu0 }
 0x480   :  { %v373_v2 = vadd.f32 %v372_v1, %v177_v0  ;;  %v798_v3 = vpop.f32.mrb[13].mxu0 }
 0x481   :  { %v375_v4 = vpop.f32.mrb[14].mxu0 }
 0x482   :  { %892 = vtanh.f32 %v373_v2  ;;  %v799_v5 = vpop.f32.mrb[15].mxu0 }
 0x48c   :  { %v893_v6 = vpop.eup %892 }
 0x48d   :  { %v379_v7 = vpack.c.bf16 %v893_v6, %v893_v6 }
 0x48f   :  { %809 = vmatmul.mubr.msk.bf16.vlgmr.msra.gmra.mrb[8].mxu1 %vm199_vm6, %v379_v7 }
 0x490   :  { %825 = vmatpush3.bf16.msra.mxu1 %v994_v10  ;;  %832 = vmatprep.mubr.msk.bf16.mxu1 %vm955_vm4, %v954_v11 }
 0x491   :  { %826 = vmatprep.subr.bf16.mxu1 %v954_v11 }
 0x494   :  { %827 = vmatpush3.bf16.msra.mxu1 %v1002_v15 }
 0x495   :  { %828 = vmatprep.subr.bf16.mxu1 %v954_v11 }
 0x498   :  { %829 = vmatpush3.bf16.msra.mxu1 %v1007_v17 }
 0x499   :  { %830 = vmatprep.subr.bf16.mxu1 %v954_v11 }
 0x49c   :  { %831 = vmatpush3.bf16.msra.mxu1 %v1013_v20 }
 0x49d   :  { %869 = vmatprep.subr.bf16.mxu1 %v956_v38 }
 0x562   :  { %v417_v9 = vpop.f32.mrb[8].mxu1 }
 0x563   :  { %v418_v12 = vadd.f32 %v417_v9, %v182_v8  ;;  %v810_v13 = vpop.f32.mrb[9].mxu1 }
 0x564   :  { %v420_v14 = vpop.f32.mrb[10].mxu1 }
 0x565   :  { %894 = vtanh.f32 %v418_v12  ;;  %v811_v16 = vpop.f32.mrb[11].mxu1 }
 0x56f   :  { %v895_v18 = vpop.eup %894 }
 0x570   :  { %v424_v19 = vpack.c.bf16 %v895_v18, %v895_v18 }
 0x572   :  { %821 = vmatmul.mubr.msk.bf16.vlgmr.msra.gmra.mrb[16].mxu0 %vm199_vm6, %v424_v19 }
 0x573   :  { %837 = vmatpush3.bf16.msra.mxu0 %v994_v10  ;;  %844 = vmatprep.mubr.msk.bf16.mxu0 %vm955_vm4, %v954_v11 }
 0x574   :  { %838 = vmatprep.subr.bf16.mxu0 %v954_v11 }
 0x577   :  { %839 = vmatpush3.bf16.msra.mxu0 %v1002_v15  ;;  %v192_v15 = vadd.f32 %v1078_v46, %v1022_v21 }
 0x578   :  { %840 = vmatprep.subr.bf16.mxu0 %v954_v11 }
 0x57b   :  { %841 = vmatpush3.bf16.msra.mxu0 %v1007_v17 }
 0x57c   :  { %842 = vmatprep.subr.bf16.mxu0 %v954_v11 }
 0x57f   :  { %843 = vmatpush3.bf16.msra.mxu0 %v1013_v20 }
 0x645   :  { %v462_v23 = vpop.f32.mrb[16].mxu0 }
 0x646   :  { %v463_v10 = vadd.f32 %v462_v23, %v187_v22  ;;  %v822_v25 = vpop.f32.mrb[17].mxu0 }
 0x647   :  { %v465_v26 = vpop.f32.mrb[18].mxu0 }
 0x648   :  { %896 = vtanh.f32 %v463_v10  ;;  %v823_v27 = vpop.f32.mrb[19].mxu0 }
 0x652   :  { %v897_v28 = vpop.eup %896 }
 0x653   :  { %v469_v29 = vpack.c.bf16 %v897_v28, %v897_v28 }
 0x655   :  { %833 = vmatmul.mubr.msk.bf16.vlgmr.msra.gmra.mrb[12].mxu1 %vm199_vm6, %v469_v29 }
 0x656   :  { %856 = vmatprep.mubr.msk.f32.mxu1 %vm955_vm4, %v954_v11  ;;  %v46_v11 = vld [vmem:[#allocation2 + $0x78] sm:$0xff]  ;;  %871 = vmatpush3.bf16.msra.mxu1 %v870_v39 }
 0x657   :  { %v873_v40 = vpack.c.bf16 %v46_v11, %v45_v37  ;;  %872 = vmatprep.subr.bf16.mxu1 %v956_v38 }
 0x65a   :  { %874 = vmatpush3.bf16.msra.mxu1 %v873_v40 }
 0x728   :  { %v507_v17 = vpop.f32.mrb[12].mxu1 }
 0x729   :  { %v508_v20 = vadd.f32 %v507_v17, %v192_v15  ;;  %v834_v30 = vpop.f32.mrb[13].mxu1 }
 0x72a   :  { %v510_v31 = vpop.f32.mrb[14].mxu1 }
 0x72b   :  { %898 = vtanh.f32 %v508_v20  ;;  %v835_v32 = vpop.f32.mrb[15].mxu1 }
 0x735   :  { %v899_v33 = vpop.eup %898 }
 0x736   :  { %v514_v34 = vpack.c.bf16 %v899_v33, %v899_v33 }
 0x738   :  { %845 = vmatmul.mubr.msk.bf16.vlgmr.msra.gmra.mrb[20].mxu0 %vm199_vm6, %v514_v34 }
 0x80b   :  { %v552_v21 = vpop.f32.mrb[20].mxu0 }
 0x80c   :  { %v553_v41 = vadd.f32 %v552_v21, %v1025_v24  ;;  %v846_v42 = vpop.f32.mrb[21].mxu0 }
 0x80d   :  { %v555_v43 = vpop.f32.mrb[22].mxu0 }
 0x80e   :  { %900 = vtanh.f32 %v553_v41  ;;  %v847_v44 = vpop.f32.mrb[23].mxu0 }
 0x818   :  { %v901_v45 = vpop.eup %900 }
 0x819   :  { %564 = vrot.lane.b32.xlu0 %v901_v45, %s957_s0 }
 0x88b   :  { %v565_v46 = vpop.permute.xlu0 %564 }
 0x88c   :  { %857 = vmatmul.mubr.msk.f32.vlgmr.msra.gmra.mrb[16].mxu1 %vm196_vm5, %v565_v46 }
 0x95f   :  { %v634_v48 = vpop.f32.mrb[16].mxu1 }
 0x960   :  { %v635_v49 = vadd.f32 %v673_v47, %v634_v48  ;;  %v858_v50 = vpop.f32.mrb[17].mxu1 }
 0x962   :  { %639 = vst.msk [vmem:[#allocation5] sm:$0x3] %vm638_vm7, %v635_v49 }
 0x963   :  { %935 = shalt.err (!%p932_p12)
}
 0x964   :  { %s936_s15 = scalar_lea.hbm %s1152_s2, 32 }
 0x965   :  { %p937_p13 = scmp.ne.s32.totalorder %s1152_s2, %s936_s15  ;;  %p940_p0 = scmp.lt.u32.totalorder %s936_s15, %s1152_s2 }
 0x967   :  { %p942_p1 = pnand %p940_p0, %p937_p13 }
 0x969   :  { %945 = shalt.err (!%p942_p1)
}
 0x96a   :  { %649 = dma.vmem_to_hbm [thread:$0]  %s647_s11, 32, %s1152_s2, [#allocation4]  }
 0x96b   :  { %948 = dma.done.wait [#allocation4], 32  }
 0x96c   :  { %949 = vsyncadd [#allocation4], 4294967264 }
 0x96d   :  { %653 = vsyncpa [#allocation3], 1 }
 0x96e   :  { %654 = vsyncpa [#allocation4], 1 }

</bundles_post_ra>
